<compile_context>
chip_gen: v7x
topology: tpu7x:2x2x1
jax: 0.10.0
libtpu: 0.0.40
codegen_flags: <defaults>
</compile_context>

<pallas_src>
import jax
import jax.numpy as jnp
import numpy as np
from jax.experimental import pallas as pl
from jax.experimental.pallas import tpu as pltpu


# ----------------------------- kernels -------------------------------------

def _make_concat_kernel(L, precision):
    # refs: x_0..x_{L-1} (TN, H), w (L, H, OP), b (1, OP) f32, o (TN, OP)
    def kernel(*refs):
        x_refs = refs[:L]
        w_ref, b_ref, o_ref = refs[L], refs[L + 1], refs[L + 2]
        # Linear(concat(Xs)) == sum_l X_l @ W_l ; accumulate in f32 on the MXU.
        acc = jnp.dot(x_refs[0][...], w_ref[0],
                      preferred_element_type=jnp.float32, precision=precision)
        for l in range(1, L):
            acc += jnp.dot(x_refs[l][...], w_ref[l],
                           preferred_element_type=jnp.float32, precision=precision)
        o_ref[...] = (acc + b_ref[...]).astype(o_ref.dtype)
    return kernel


def _make_maxpool_kernel(L):
    # refs: x_0..x_{L-1} (TN, H), o (TN, H)
    def kernel(*refs):
        o_ref = refs[L]
        m = refs[0][...]
        for l in range(1, L):
            m = jnp.maximum(m, refs[l][...])
        o_ref[...] = m
    return kernel


def _make_attention_kernel(L, precision):
    # refs: x_0..x_{L-1} (TN, H), w (H, 1), b (1, 1) f32 in SMEM, o (TN, H)
    def kernel(*refs):
        x_refs = refs[:L]
        w_ref, b_ref, o_ref = refs[L], refs[L + 1], refs[L + 2]
        w = w_ref[...]                                    # (H, 1)
        b = b_ref[0, 0]                                   # scalar bias from SMEM
        # Layer 0 initializes the accumulator directly (no zero-fill + add).
        x0 = x_refs[0][...]
        s0 = jax.nn.sigmoid(jnp.dot(x0, w, preferred_element_type=jnp.float32,
                                    precision=precision) + b)   # (TN, 1) f32, EUP
        acc = s0 * x0                                     # promoted to f32 (TN, H)
        for l in range(1, L):
            x = x_refs[l][...]
            s = jax.nn.sigmoid(jnp.dot(x, w, preferred_element_type=jnp.float32,
                                       precision=precision) + b)
            acc = acc + s * x
        o_ref[...] = acc.astype(o_ref.dtype)
    return kernel


# ----------------------------- helpers -------------------------------------

def _cdiv(a, b):
    return (a + b - 1) // b


def _round_up(x, m):
    return _cdiv(x, m) * m


def _sublane(dtype):
    # sublane packing: 8 rows for 32-bit, 16 for bf16, 32 for int8/fp8
    return max(8, 32 // jnp.dtype(dtype).itemsize)


def _pick_row_tile(N, per_row_bytes, fixed_bytes, sublane,
                   vmem_budget=12 * 1024 * 1024, min_steps=8):
    """Largest sublane-aligned row tile (<= 512) whose full working set
    (buffered input tiles + buffered output tile + f32 accumulator, all counted
    in per_row_bytes, plus fixed_bytes for buffered weights/bias) fits a
    conservative 12 MiB VMEM budget (safe under v5e's 16 MiB scoped default and
    v7x's 64 MiB physical VMEM).  The tile is then shrunk so the N-grid has at
    least `min_steps` (and an even number of) steps, keeping both v7x
    TensorCores busy and giving the pipeline something to overlap."""
    avail = max(vmem_budget - fixed_bytes, per_row_bytes * sublane)
    tn = min(512, int(avail // per_row_bytes))
    tn = max(sublane, tn - tn % sublane)
    if N <= tn:
        return N                                   # single full-array block
    steps = max(_cdiv(N, tn), min(min_steps, _cdiv(N, sublane)))
    if steps % 2:
        steps += 1                                 # even step count for 2 TCs
    tn = _round_up(_cdiv(N, steps), sublane)
    return min(tn, N)


def _x_spec(tn, H, depth=2):
    index_map = lambda i: (i, 0)
    if depth > 2 and hasattr(pl, "Buffered"):
        try:
            return pl.BlockSpec((tn, H), index_map, pipeline_mode=pl.Buffered(depth))
        except TypeError:
            pass  # older BlockSpec without pipeline_mode — fall back to default
    return pl.BlockSpec((tn, H), index_map)


_PARALLEL_N = pltpu.CompilerParams(dimension_semantics=("parallel",))


# ----------------------------- module --------------------------------------

class DenseConnection:
    """JAX/Pallas port of the PyTorch DenseConnection module (forward only)."""

    def __init__(self, in_dim, out_dim, aggregation='concat', key=None,
                 param_dtype=jnp.float32, compute_dtype=jnp.bfloat16):
        self.in_dim = in_dim
        self.out_dim = out_dim
        self.aggregation = aggregation
        self.compute_dtype = jnp.dtype(compute_dtype)
        if key is None:
            key = jax.random.PRNGKey(0)

        if aggregation == 'concat':
            kw, kb = jax.random.split(key)
            bound = 1.0 / np.sqrt(in_dim)
            # nn.Linear(in_dim, out_dim): weight (out_dim, in_dim), bias (out_dim,)
            self.weight = jax.random.uniform(kw, (out_dim, in_dim), param_dtype,
                                             -bound, bound)
            self.bias = jax.random.uniform(kb, (out_dim,), param_dtype,
                                           -bound, bound)
            # Kernel-side layout, built ONCE: transpose, pad the out axis to a
            # lane-dense multiple of 128, cast to the compute dtype.
            self.out_dim_p = _round_up(out_dim, 128)
            wt = jnp.zeros((in_dim, self.out_dim_p), self.compute_dtype)
            self._w_t = wt.at[:, :out_dim].set(self.weight.T.astype(self.compute_dtype))
            bp = jnp.zeros((1, self.out_dim_p), jnp.float32)
            self._b = bp.at[0, :out_dim].set(self.bias.astype(jnp.float32))
            self._w_slabs = {}   # (L, H) -> (L, H, out_dim_p) metadata reshape, cached

        elif aggregation == 'attention':
            kw, kb = jax.random.split(key)
            bound = 1.0 / np.sqrt(in_dim)
            # nn.Linear(in_dim, 1): weight (1, in_dim), bias (1,)
            self.att_weight = jax.random.uniform(kw, (1, in_dim), param_dtype,
                                                 -bound, bound)
            self.att_bias = jax.random.uniform(kb, (1,), param_dtype,
                                               -bound, bound)
            # Kernel-side layouts, built ONCE.
            self._w_att = self.att_weight.T.astype(self.compute_dtype)   # (in_dim, 1)
            self._b_att = self.att_bias.reshape(1, 1).astype(jnp.float32)

    def __call__(self, Xs):
        assert len(Xs) >= 1
        L = len(Xs)
        N, H = Xs[0].shape
        out_dtype = Xs[0].dtype

        if self.aggregation == 'maxpool':
            cdt = jnp.dtype(out_dtype)           # elementwise max: keep dtype, exact
        else:
            cdt = self.compute_dtype
            # Memory-bound kernels: consume activations in the half-width compute
            # dtype (no-op when the upstream layer already emits bf16); all
            # accumulation stays in f32 inside the kernel.
            Xs = [x if x.dtype == cdt else x.astype(cdt) for x in Xs]

        in_bytes = cdt.itemsize
        out_bytes = jnp.dtype(out_dtype).itemsize
        sub = _sublane(cdt)
        prec = (jax.lax.Precision.HIGHEST if cdt == jnp.dtype(jnp.float32)
                else jax.lax.Precision.DEFAULT)

        if self.aggregation == 'concat':
            assert L * H == self.in_dim
            out_dim, out_dim_p = self.out_dim, self.out_dim_p
            if (L, H) not in self._w_slabs:
                # metadata-only reshape of the precomputed transposed/padded weight
                self._w_slabs[(L, H)] = self._w_t.reshape(L, H, out_dim_p)
            w = self._w_slabs[(L, H)]
            # full working set: L double-buffered input tiles, double-buffered
            # output tile, f32 accumulator; fixed: double-buffered weight + bias.
            per_row = 2 * L * H * in_bytes + 2 * out_dim_p * out_bytes + out_dim_p * 4
            fixed = 2 * L * H * out_dim_p * in_bytes + 2 * out_dim_p * 4
            tn = _pick_row_tile(N, per_row, fixed, sub)
            grid = (_cdiv(N, tn),)
            cost = pl.CostEstimate(
                flops=2 * N * self.in_dim * out_dim_p,
                transcendentals=0,
                bytes_accessed=(N * self.in_dim + self.in_dim * out_dim_p) * in_bytes
                               + N * out_dim_p * out_bytes + out_dim_p * 4)
            out = pl.pallas_call(
                _make_concat_kernel(L, prec),
                out_shape=jax.ShapeDtypeStruct((N, out_dim_p), out_dtype),
                grid=grid,
                in_specs=[_x_spec(tn, H)] * L + [
                    pl.BlockSpec((L, H, out_dim_p), lambda i: (0, 0, 0)),
                    pl.BlockSpec((1, out_dim_p), lambda i: (0, 0)),
                ],
                out_specs=pl.BlockSpec((tn, out_dim_p), lambda i: (i, 0)),
                compiler_params=_PARALLEL_N,
                cost_estimate=cost,
            )(*Xs, w, self._b)
            return out if out_dim_p == out_dim else out[:, :out_dim]

        elif self.aggregation == 'maxpool':
            depth = 3                                     # deeper input pipeline
            per_row = depth * L * H * in_bytes + 2 * H * out_bytes
            tn = _pick_row_tile(N, per_row, 0, sub)
            grid = (_cdiv(N, tn),)
            return pl.pallas_call(
                _make_maxpool_kernel(L),
                out_shape=jax.ShapeDtypeStruct((N, H), out_dtype),
                grid=grid,
                in_specs=[_x_spec(tn, H, depth)] * L,
                out_specs=pl.BlockSpec((tn, H), lambda i: (i, 0)),
                compiler_params=_PARALLEL_N,
            )(*Xs)

        elif self.aggregation == 'attention':
            assert H == self.in_dim
            depth = 3                                     # deeper input pipeline
            w = self._w_att if self._w_att.dtype == cdt else self._w_att.astype(cdt)
            per_row = depth * L * H * in_bytes + 2 * H * out_bytes + H * 4
            fixed = 2 * H * in_bytes
            tn = _pick_row_tile(N, per_row, fixed, sub)
            grid = (_cdiv(N, tn),)
            cost = pl.CostEstimate(
                flops=4 * N * L * H,                      # score matmul + weighted sum
                transcendentals=N * L,                    # sigmoid
                bytes_accessed=(L * N * H + H) * in_bytes + N * H * out_bytes + 4)
            return pl.pallas_call(
                _make_attention_kernel(L, prec),
                out_shape=jax.ShapeDtypeStruct((N, H), out_dtype),
                grid=grid,
                in_specs=[_x_spec(tn, H, depth)] * L + [
                    pl.BlockSpec((H, 1), lambda i: (0, 0)),
                    # (1,1) f32 bias lives in SMEM as a scalar (no padded VMEM tile).
                    pl.BlockSpec(memory_space=pltpu.MemorySpace.SMEM),
                ],
                out_specs=pl.BlockSpec((tn, H), lambda i: (i, 0)),
                compiler_params=_PARALLEL_N,
                cost_estimate=cost,
            )(*Xs, w, self._b_att)

        else:
            raise Exception('Unknown aggregation')


# ------------------------------- main ---------------------------------------

if __name__ == "__main__":
    key = jax.random.PRNGKey(0)
    # nodes, hidden (128 => lane-dense stores), #layers
    N, H, L = 1024, 128, 3
    keys = jax.random.split(key, L + 1)
    # Activations arrive in bf16 (what an upstream bf16 GNN layer emits), which
    # is where the 2x HBM-bandwidth win of the memory-bound kernels comes from.
    Xs = [jax.random.normal(keys[i], (N, H), jnp.float32).astype(jnp.bfloat16)
          for i in range(L)]
    pkey = keys[L]
    f32 = jnp.float32

    # --- concat: in_dim = L*H, out_dim = H ---
    concat_mod = DenseConnection(L * H, H, 'concat', key=jax.random.fold_in(pkey, 0))
    out_c = jax.block_until_ready(concat_mod(Xs))
    assert out_c.shape == (N, H) and out_c.dtype == Xs[0].dtype
    w_bf = concat_mod.weight.T.astype(jnp.bfloat16)
    ref_c = (jnp.dot(jnp.concatenate(Xs, axis=-1), w_bf,
                     preferred_element_type=f32)
             + concat_mod.bias.astype(f32)).astype(jnp.bfloat16)
    np.testing.assert_allclose(np.asarray(out_c.astype(f32)),
                               np.asarray(ref_c.astype(f32)),
                               atol=2e-2, rtol=2e-2)

    # --- maxpool (kept in the input dtype -> bit-exact) ---
    max_mod = DenseConnection(H, H, 'maxpool')
    out_m = jax.block_until_ready(max_mod(Xs))
    ref_m = jnp.max(jnp.stack(Xs, axis=-1), axis=-1)
    assert out_m.shape == (N, H) and out_m.dtype == Xs[0].dtype
    np.testing.assert_array_equal(np.asarray(out_m.astype(f32)),
                                  np.asarray(ref_m.astype(f32)))

    # --- attention: in_dim = H ---
    att_mod = DenseConnection(H, H, 'attention', key=jax.random.fold_in(pkey, 1))
    out_a = jax.block_until_ready(att_mod(Xs))
    assert out_a.shape == (N, H) and out_a.dtype == Xs[0].dtype
    pps = jnp.stack(Xs, axis=1)                           # (N, L, H) like torch
    logits = (jnp.einsum('nlh,oh->nlo', pps,
                         att_mod.att_weight.astype(jnp.bfloat16),
                         preferred_element_type=f32)[..., 0]
              + att_mod.att_bias.astype(f32))             # (N, L) f32
    score = jax.nn.sigmoid(logits)
    ref_a = jnp.einsum('nl,nlh->nh', score, pps.astype(f32)).astype(jnp.bfloat16)
    np.testing.assert_allclose(np.asarray(out_a.astype(f32)),
                               np.asarray(ref_a.astype(f32)),
                               atol=2e-2, rtol=2e-2)

    print("KERNEL_OK")
</pallas_src>

<mosaic_0001>
module attributes {stable_mosaic.version = 11 : i64} {
  func.func @kernel(%arg0: i32, %arg1: memref<128x128xbf16, #tpu.memory_space<vmem>>, %arg2: memref<128x128xbf16, #tpu.memory_space<vmem>>, %arg3: memref<128x128xbf16, #tpu.memory_space<vmem>>, %arg4: memref<3x128x128xbf16, #tpu.memory_space<vmem>>, %arg5: memref<1x128xf32, #tpu.memory_space<vmem>>, %arg6: memref<128x128xbf16, #tpu.memory_space<vmem>>) attributes {dimension_semantics = [#tpu.dimension_semantics<parallel>], iteration_bounds = array<i64: 8>, scalar_prefetch = 0 : i64, scratch_operands = 0 : i64, tpu.core_type = #tpu.core_type<tc>, window_params = [{transform_indices = @transform_0, window_bounds = array<i64: 128, 128>}, {transform_indices = @transform_1, window_bounds = array<i64: 128, 128>}, {transform_indices = @transform_2, window_bounds = array<i64: 128, 128>}, {pipeline_mode = #tpu.pipeline_mode<synchronous>, transform_indices = @transform_3, window_bounds = array<i64: 3, 128, 128>}, {pipeline_mode = #tpu.pipeline_mode<synchronous>, transform_indices = @transform_4, window_bounds = array<i64: 1, 128>}, {transform_indices = @transform_5, window_bounds = array<i64: 128, 128>}]} {
    %c0 = arith.constant 0 : index
    %c0_0 = arith.constant 0 : index
    %0 = vector.load %arg1[%c0, %c0_0] : memref<128x128xbf16, #tpu.memory_space<vmem>>, vector<128x128xbf16>
    %c0_1 = arith.constant 0 : index
    %c0_2 = arith.constant 0 : index
    %c0_3 = arith.constant 0 : index
    %1 = vector.load %arg4[%c0_1, %c0_2, %c0_3] : memref<3x128x128xbf16, #tpu.memory_space<vmem>>, vector<1x128x128xbf16>
    %2 = vector.shape_cast %1 : vector<1x128x128xbf16> to vector<128x128xbf16>
    %cst = arith.constant dense<0.000000e+00> : vector<128x128xf32>
    %3 = tpu.matmul %0, %2, %cst {dimension_numbers = #tpu.dot_dimension_numbers<[1], [0], [0], [1], [0, 0, 1, 1], [], []>} : vector<128x128xbf16>, vector<128x128xbf16>, vector<128x128xf32> -> vector<128x128xf32>
    %c0_4 = arith.constant 0 : index
    %c0_5 = arith.constant 0 : index
    %4 = vector.load %arg2[%c0_4, %c0_5] : memref<128x128xbf16, #tpu.memory_space<vmem>>, vector<128x128xbf16>
    %c1 = arith.constant 1 : index
    %c0_6 = arith.constant 0 : index
    %c0_7 = arith.constant 0 : index
    %5 = vector.load %arg4[%c1, %c0_6, %c0_7] : memref<3x128x128xbf16, #tpu.memory_space<vmem>>, vector<1x128x128xbf16>
    %6 = vector.shape_cast %5 : vector<1x128x128xbf16> to vector<128x128xbf16>
    %cst_8 = arith.constant dense<0.000000e+00> : vector<128x128xf32>
    %7 = tpu.matmul %4, %6, %cst_8 {dimension_numbers = #tpu.dot_dimension_numbers<[1], [0], [0], [1], [0, 0, 1, 1], [], []>} : vector<128x128xbf16>, vector<128x128xbf16>, vector<128x128xf32> -> vector<128x128xf32>
    %8 = arith.addf %3, %7 : vector<128x128xf32>
    %c0_9 = arith.constant 0 : index
    %c0_10 = arith.constant 0 : index
    %9 = vector.load %arg3[%c0_9, %c0_10] : memref<128x128xbf16, #tpu.memory_space<vmem>>, vector<128x128xbf16>
    %c2 = arith.constant 2 : index
    %c0_11 = arith.constant 0 : index
    %c0_12 = arith.constant 0 : index
    %10 = vector.load %arg4[%c2, %c0_11, %c0_12] : memref<3x128x128xbf16, #tpu.memory_space<vmem>>, vector<1x128x128xbf16>
    %11 = vector.shape_cast %10 : vector<1x128x128xbf16> to vector<128x128xbf16>
    %cst_13 = arith.constant dense<0.000000e+00> : vector<128x128xf32>
    %12 = tpu.matmul %9, %11, %cst_13 {dimension_numbers = #tpu.dot_dimension_numbers<[1], [0], [0], [1], [0, 0, 1, 1], [], []>} : vector<128x128xbf16>, vector<128x128xbf16>, vector<128x128xf32> -> vector<128x128xf32>
    %13 = arith.addf %8, %12 : vector<128x128xf32>
    %c0_14 = arith.constant 0 : index
    %c0_15 = arith.constant 0 : index
    %14 = vector.load %arg5[%c0_14, %c0_15] : memref<1x128xf32, #tpu.memory_space<vmem>>, vector<1x128xf32>
    %15 = vector.broadcast %14 : vector<1x128xf32> to vector<128x128xf32>
    %16 = arith.addf %13, %15 : vector<128x128xf32>
    %17 = arith.truncf %16 : vector<128x128xf32> to vector<128x128xbf16>
    %c0_16 = arith.constant 0 : index
    %c0_17 = arith.constant 0 : index
    %18 = vector.load %arg6[%c0_16, %c0_17] : memref<128x128xbf16, #tpu.memory_space<vmem>>, vector<128x128xbf16>
    tpu.vector_store %arg6[%c0_16, %c0_17], %17 {strides = array<i32>} : memref<128x128xbf16, #tpu.memory_space<vmem>>, vector<128x128xbf16>,
    return
  }
  func.func @transform_0(%arg0: i32) -> (i32, i32) {
    %c0_i32 = arith.constant 0 : i32
    %c0_i32_0 = arith.constant 0 : i32
    return %arg0, %c0_i32 : i32, i32
  }
  func.func @transform_1(%arg0: i32) -> (i32, i32) {
    %c0_i32 = arith.constant 0 : i32
    %c0_i32_0 = arith.constant 0 : i32
    return %arg0, %c0_i32 : i32, i32
  }
  func.func @transform_2(%arg0: i32) -> (i32, i32) {
    %c0_i32 = arith.constant 0 : i32
    %c0_i32_0 = arith.constant 0 : i32
    return %arg0, %c0_i32 : i32, i32
  }
  func.func @transform_3(%arg0: i32) -> (i32, i32, i32) {
    %c0_i32 = arith.constant 0 : i32
    %c0_i32_0 = arith.constant 0 : i32
    %c0_i32_1 = arith.constant 0 : i32
    %c0_i32_2 = arith.constant 0 : i32
    return %c0_i32, %c0_i32_0, %c0_i32_1 : i32, i32, i32
  }
  func.func @transform_4(%arg0: i32) -> (i32, i32) {
    %c0_i32 = arith.constant 0 : i32
    %c0_i32_0 = arith.constant 0 : i32
    %c0_i32_1 = arith.constant 0 : i32
    return %c0_i32, %c0_i32_0 : i32, i32
  }
  func.func @transform_5(%arg0: i32) -> (i32, i32) {
    %c0_i32 = arith.constant 0 : i32
    %c0_i32_0 = arith.constant 0 : i32
    return %arg0, %c0_i32 : i32, i32
  }
}

</mosaic_0001>

<bundles_post_ra>
// kernel: tpu_custom_call.1
= control target key start
LH: loop header
LB: loop body
LE: loop exit
PB: predicated region body
PF: predicated region fallthrough
CT: control target
= control target key end

     0   :  { %s2335_s0 = inlined_call_operand.hbm [shape: bf16[1024,128], index: 0, kind: input, shape index: {}]   ;;  %s2336_s1 = inlined_call_operand.hbm [shape: bf16[1024,128], index: 1, kind: input, shape index: {}]   ;;  %s2337_s2 = inlined_call_operand.hbm [shape: bf16[1024,128], index: 2, kind: input, shape index: {}]   ;;  %s2338_s3 = inlined_call_operand.hbm [shape: bf16[3,128,128], index: 3, kind: input, shape index: {}]   ;;  %s2339_s4 = inlined_call_operand.vmem [shape: f32[1,128], index: 4, kind: input, shape index: {}]   ;;  %s2340_s5 = inlined_call_operand.hbm [shape: bf16[1024,128], index: 5, kind: output, shape index: {}]  }
   0x1   :  { %2360 = sst [smem:[#allocation21_spill]] %s2335_s0 }
   0x2   :  { %2361 = sst [smem:[#allocation22_spill]] %s2336_s1 }
   0x3   :  { %10 = vsyncpa [#allocation3], 0 }
   0x4   :  { %12 = vsyncpa [#allocation3 + $0x1], 0 }
   0x5   :  { %13 = vsyncpa [#allocation6], 0 }
   0x6   :  { %15 = vsyncpa [#allocation6 + $0x1], 0 }
   0x7   :  { %16 = vsyncpa [#allocation9], 0 }
   0x8   :  { %17 = vsyncpa [#allocation4], 0 }
   0x9   :  { %19 = vsyncpa [#allocation4 + $0x1], 0  ;;  %s1976_s18 = smov 0   ;;  %s1978_s19 = smov 0  }
   0xa   :  { %s1980_s20 = smov 0   ;;  %s1982_s21 = smov 0  }
   0xb LB: > { %2362 = sst [smem:[#allocation15_spill]] %s1923_s18  ;;  %s1997_s22 = sadd.s32 1, %s1935_s21   ;;  %s1935_s21 = sphi %s1982_s21, %s2392_s21   ;;  %s1931_s20 = sphi %s1980_s20, %s2397_s20   ;;  %s1927_s19 = sphi %s1978_s19, %s2396_s19   ;;  %s1923_s18 = sphi %s1976_s18, %s2395_s18  }
   0xc   : > { %2363 = sst [smem:[#allocation16_spill]] %s1931_s20  ;;  %s32_s23 = sadd.s32 1, %s1931_s20 }
   0xd   : > { %2364 = sst [smem:[#allocation17_spill]] %s1935_s21  ;;  %s29_s24 = ssub.s32 %s1935_s21, %s1997_s22 }
   0xe   : > { %2365 = sst [smem:[#allocation18_spill]] %s1997_s22  ;;  %p2341_p0 = scmp.ne.s32.totalorder %s1931_s20, %s1927_s19 }
   0xf   : > { %p30_p1 = scmp.eq.s32.totalorder %s29_s24, 0  ;;  %p40_p2 = scmp.eq.s32.totalorder %s1935_s21, 0 }
  0x10   : > { %p1655_p4 = scmp.lt.s32.totalorder %s1935_s21, 8  ;;  %s205_s26 = sand.u32 1, %s1931_s20  }
  0x11   : > { %s2006_s25 = scalar_select %p30_p1, %s1931_s20, %s32_s23  }
  0x12   : > { %p41_p3 = por %p40_p2, %p2341_p0  ;;  %s2015_s27 = sshll.u32 %s205_s26, 6 }
  0x13   : > { %2366 = sst [smem:[#allocation19_spill]] %s2006_s25  ;;  %s2018_s28 = sshll.u32 %s1935_s21, 10 }
  0x14   : > { %p2020_p5 = pnand %p1655_p4, %p41_p3  ;;  %s226_s30 = sand.u32 1, %s1935_s21  }
  0x15   : > { %s2368_s1 = sld [smem:[#allocation22_spill]]  ;;  %s230_s9 = scalar_lea.vmem [#allocation5], %s2015_s27 }
  0x16   : > { %s2367_s29 = scalar_select %p2020_p5, 1, 0 }
  0x17   : > { %s237_s10 = sshll.u32 %s230_s9, 4  ;;  %s2034_s11 = scalar_lea.sflag [#allocation6], %s226_s30  ;;  %s2032_s10 = int_to_ptr.vmem [resolvable:$true] %s237_s10 }
  0x18   : > { %p2040_p7 = pneg %p2020_p5 }
  0x1a   : > { %s2369_s13 = scalar_select %p2040_p7, 1, 0 }
  0x1b   : > { %s2029_s8 = scalar_lea.hbm %s2368_s1, %s2018_s28  ;;  %s1748_s16 = scalar_lea.hbm %s2368_s1, 8192 }
  0x1c   : > { %s1743_s12 = scalar_lea.hbm %s2029_s8, 1024  ;;  %p1749_p10 = scmp.lt.u32.totalorder %s2029_s8, %s2368_s1 }
  0x1d   : > { %p1744_p6 = scmp.ne.s32.totalorder %s2029_s8, %s1743_s12  ;;  %p1750_p11 = scmp.lt.u32.totalorder %s1748_s16, %s1743_s12 }
  0x1e   : > { %p1752_p13 = scmp.lt.u32.totalorder %s1743_s12, %s2029_s8 }
  0x1f   : > { %p1746_p8 = pnand %p2040_p7, %p1744_p6  ;;  %p1751_p12 = por %p1750_p11, %p1749_p10 }
  0x21   : > { %p1747_p9 = pneg %p1746_p8  ;;  %p1753_p1 = por %p1752_p13, %p1751_p12 }
  0x23   : > { %p1754_p2 = pnand %p1753_p1, %p1747_p9 }
  0x25   : > { %1757 = shalt.err (!%p1754_p2)
}
  0x26   : > { %s1758_s24 = scalar_lea.vmem %s2032_s10, 1024  ;;  %s1937_s30 = smov [#allocation5]  }
  0x27   : > { %p1759_p3 = scmp.ne.s32.totalorder %s2032_s10, %s1758_s24  ;;  %s1763_s6 = sshll.u32 %s1937_s30, 4  ;;  %s1764_s6 = int_to_ptr.vmem [resolvable:$false] %s1763_s6 }
  0x28   : > { %s1765_s7 = scalar_lea.vmem %s1764_s6, 2048  ;;  %p1766_p8 = scmp.lt.s32.totalorder %s2032_s10, %s1764_s6 }
  0x29   : > { %p1761_p4 = pnand %p1759_p3, %p2040_p7  ;;  %p1767_p0 = scmp.lt.s32.totalorder %s1765_s7, %s1758_s24 }
  0x2b   : > { %p1762_p6 = pneg %p1761_p4  ;;  %p1768_p10 = por %p1767_p0, %p1766_p8 }
  0x2d   : > { %p1769_p11 = pnand %p1768_p10, %p1762_p6 }
  0x2f   : > { %1772 = shalt.err (!%p1769_p11)
}
  0x30   : > { %s2342_s9 = smov 64   ;;  %s2344_s12 = smov 4  }
  0x31   : > { %1646 = dma.hbm_to_vmem [thread:$0]  (!%p2020_p5), %s2029_s8, 1024, %s2032_s10, %s2034_s11, %s2342_s9, %s2342_s9, %s2344_s12  }
  0x32   : > { %s2068_s14 = sadd.s32 4294967295, %s1935_s21   ;;  %s1276_s15 = sadd.s32 4294967294, %s1935_s21  }
  0x33   : > { %p45_p0 = scmp.ne.s32.totalorder %s1927_s19, %s1923_s18  ;;  %p2348_p9 = scmp.eq.s32.totalorder %s2068_s14, 0 }
  0x34   : > { %p163_p12 = scmp.eq.s32.totalorder %s2068_s14, 7  ;;  %p169_p13 = scmp.eq.s32.totalorder %s1276_s15, 7 }
  0x35   : > { %p2077_p1 = por %p2348_p9, %p45_p0  ;;  %p1277_p2 = scmp.ge.s32.totalorder %s1935_s21, 1 }
  0x36   : > { %p2371_p3 = scmp.ne.s32.totalorder %s1931_s20, %s1927_s19  ;;  %p2089_p6 = por %p169_p13, %p45_p0 }
  0x37   : > { %s2370_s16 = scalar_select %p2077_p1, 1, 0 }
  0x38   : > { %p2085_p4 = por %p163_p12, %p2371_p3  ;;  %p176_p8 = scmp.lt.s32.totalorder %s1935_s21, 9 }
  0x39   : > { %s2373_s10 = scalar_select %p2089_p6, 1, 0 }
  0x3a   : > { %s2372_s8 = scalar_select %p2085_p4, 1, 0 }
  0x3b   : > { %2374 = sst [smem:[#allocation20_spill]] %s2373_s10  ;;  %p2094_p10 = pnand %p1277_p2, %p176_p8 }
  0x3c   : > { %s1940_s23 = smov [#allocation8]   ;;  %s2376_s0 = sld [smem:[#allocation21_spill]] }
  0x3d   : > { %s2375_s17 = scalar_select %p2094_p10, 1, 0 }
  0x3e   : > { %s188_s24 = sshll.u32 %s1940_s23, 4  ;;  %p1636_p11 = pneg %p2094_p10  ;;  %s2098_s24 = int_to_ptr.vmem [resolvable:$true] %s188_s24 }
  0x3f   : > { %s209_s15 = scalar_lea.vmem [#allocation2], %s2015_s27  ;;  %s2119_s23 = scalar_lea.sflag [#allocation3], %s205_s26 }
  0x40   : > { %s216_s9 = sshll.u32 %s209_s15, 4  ;;  %p2111_p0 = pnand %p1636_p11, %p2348_p9  ;;  %s2115_s9 = int_to_ptr.vmem [resolvable:$true] %s216_s9 }
  0x42   : > { %s2106_s7 = scalar_lea.hbm %s2376_s0, %s2018_s28  ;;  %s1778_s25 = scalar_lea.hbm %s2376_s0, 8192 }
  0x43   : > { %s2377_s12 = scalar_select %p2111_p0, 1, 0 }
  0x44   : > { %s1773_s1 = scalar_lea.hbm %s2106_s7, 1024  ;;  %p1779_p3 = scmp.lt.u32.totalorder %s2106_s7, %s2376_s0 }
  0x45   : > { %p1774_p12 = scmp.ne.s32.totalorder %s2106_s7, %s1773_s1  ;;  %p1780_p8 = scmp.lt.u32.totalorder %s1778_s25, %s1773_s1 }
  0x46   : > { %p1782_p9 = scmp.lt.u32.totalorder %s1773_s1, %s2106_s7 }
  0x47   : > { %p1776_p13 = pnand %p1774_p12, %p2040_p7  ;;  %p1781_p11 = por %p1780_p8, %p1779_p3 }
  0x49   : > { %p1777_p2 = pneg %p1776_p13  ;;  %p1783_p6 = por %p1782_p9, %p1781_p11 }
  0x4b   : > { %p1784_p4 = pnand %p1783_p6, %p1777_p2 }
  0x4d   : > { %1787 = shalt.err (!%p1784_p4)
}
  0x4e   : > { %s1788_s26 = scalar_lea.vmem %s2115_s9, 1024  ;;  %s1941_s30 = smov [#allocation2]  }
  0x4f   : > { %p1789_p12 = scmp.ne.s32.totalorder %s2115_s9, %s1788_s26  ;;  %s1793_s6 = sshll.u32 %s1941_s30, 4  ;;  %s1794_s6 = int_to_ptr.vmem [resolvable:$false] %s1793_s6 }
  0x50   : > { %s1795_s22 = scalar_lea.vmem %s1794_s6, 2048  ;;  %p1796_p10 = scmp.lt.s32.totalorder %s2115_s9, %s1794_s6 }
  0x51   : > { %p1791_p13 = pnand %p1789_p12, %p2040_p7  ;;  %p1797_p0 = scmp.lt.s32.totalorder %s1795_s22, %s1788_s26 }
  0x53   : > { %p1792_p1 = pneg %p1791_p13  ;;  %p1798_p3 = por %p1797_p0, %p1796_p10 }
  0x55   : > { %p1799_p8 = pnand %p1798_p3, %p1792_p1 }
  0x57   : > { %1802 = shalt.err (!%p1799_p8)
}
  0x58   : > { %s2378_s1 = smov 4   ;;  %s2379_s25 = smov 64  }
  0x59   : > { %1643 = dma.hbm_to_vmem [thread:$0]  (!%p2020_p5), %s2106_s7, 1024, %s2115_s9, %s2119_s23, %s2379_s25, %s2379_s25, %s2378_s1  }
  0x5a   : > { %s2150_s0 = scalar_lea.hbm %s2337_s2, %s2018_s28  ;;  %s1803_s22 = scalar_lea.hbm %s2338_s3, 3072 }
  0x5b   : > { %p1804_p9 = scmp.ne.s32.totalorder %s2338_s3, %s1803_s22  ;;  %p2380_p1 = scmp.ne.s32.totalorder %s2377_s12, 0 }
  0x5c   : > { %p1810_p0 = scmp.lt.u32.totalorder %s1803_s22, %s2338_s3 }
  0x5d   : > { %p1805_p4 = pneg %p2380_p1 }
  0x5f   : > { %p1806_p6 = pnand %p1805_p4, %p1804_p9 }
  0x61   : > { %p1807_p10 = pneg %p1806_p6 }
  0x63   : > { %p1812_p2 = pnand %p1810_p0, %p1807_p10 }
  0x65   : > { %1815 = shalt.err (!%p1812_p2)
}
  0x66   : > { %s1816_s28 = scalar_lea.vmem %s2098_s24, 3072  ;;  %p1824_p3 = scmp.lt.s32.totalorder %s2098_s24, %s2098_s24 }
  0x67   : > { %p1817_p11 = scmp.ne.s32.totalorder %s2098_s24, %s1816_s28  ;;  %p1825_p8 = scmp.lt.s32.totalorder %s1816_s28, %s1816_s28 }
  0x69   : > { %p1819_p12 = pnand %p1817_p11, %p1805_p4  ;;  %p1826_p5 = por %p1825_p8, %p1824_p3 }
  0x6b   : > { %p1820_p13 = pneg %p1819_p12 }
  0x6d   : > { %p1827_p7 = pnand %p1826_p5, %p1820_p13 }
  0x6f   : > { %1830 = shalt.err (!%p1827_p7)
}
  0x70   : > { %1639 = dma.hbm_to_vmem [thread:$0]  (!%p2380_p1), %s2338_s3, 3072, %s2098_s24, [#allocation9], %s2379_s25, %s2379_s25, %s2378_s1  }
  0x71   : > { %s251_s21 = scalar_lea.vmem [#allocation7], %s2015_s27  ;;  %s1831_s10 = scalar_lea.hbm %s2150_s0, 1024 }
  0x72   : > { %s258_s9 = sshll.u32 %s251_s21, 4  ;;  %p1832_p5 = scmp.ne.s32.totalorder %s2150_s0, %s1831_s10  ;;  %s2177_s9 = int_to_ptr.vmem [resolvable:$true] %s258_s9 }
  0x73   : > { %p2381_p7 = scmp.ne.s32.totalorder %s2369_s13, 0  ;;  %s1836_s23 = scalar_lea.hbm %s2337_s2, 8192 }
  0x74   : > { %p1837_p6 = scmp.lt.u32.totalorder %s2150_s0, %s2337_s2  ;;  %p1838_p10 = scmp.lt.u32.totalorder %s1836_s23, %s1831_s10 }
  0x75   : > { %p1834_p9 = pnand %p1832_p5, %p2381_p7  ;;  %p1840_p1 = scmp.lt.u32.totalorder %s1831_s10, %s2150_s0 }
  0x76   : > { %p1839_p0 = por %p1838_p10, %p1837_p6 }
  0x77   : > { %p1835_p4 = pneg %p1834_p9 }
  0x78   : > { %p1841_p2 = por %p1840_p1, %p1839_p0 }
  0x7a   : > { %p1842_p11 = pnand %p1841_p2, %p1835_p4 }
  0x7c   : > { %1845 = shalt.err (!%p1842_p11)
}
  0x7d   : > { %s1846_s27 = scalar_lea.vmem %s2177_s9, 1024  ;;  %s1942_s24 = smov [#allocation7]  }
  0x7e   : > { %p1847_p12 = scmp.ne.s32.totalorder %s2177_s9, %s1846_s27  ;;  %s1851_s26 = sshll.u32 %s1942_s24, 4  ;;  %s1852_s26 = int_to_ptr.vmem [resolvable:$false] %s1851_s26 }
  0x7f   : > { %s1853_s6 = scalar_lea.vmem %s1852_s26, 2048  ;;  %p1854_p8 = scmp.lt.s32.totalorder %s2177_s9, %s1852_s26 }
  0x80   : > { %p1849_p13 = pnand %p1847_p12, %p2381_p7  ;;  %p1855_p5 = scmp.lt.s32.totalorder %s1853_s6, %s1846_s27 }
  0x82   : > { %p1850_p3 = pneg %p1849_p13  ;;  %p1856_p9 = por %p1855_p5, %p1854_p8 }
  0x84   : > { %p1857_p6 = pnand %p1856_p9, %p1850_p3 }
  0x86   : > { %1860 = shalt.err (!%p1857_p6)
}
  0x87   : > { %p2382_p4 = scmp.ne.s32.totalorder %s2367_s29, 0  ;;  %p2383_p7 = scmp.ne.s32.totalorder %s2375_s17, 0 }
  0x88   : > { %s2207_s13 = sand.u32 (!%p2383_p7), 1, %s1927_s19   ;;  %p2384_p10 = scmp.ne.s32.totalorder (!%p2383_p7), %s2370_s16, 0 }
  0x89   : > { %1649 = dma.hbm_to_vmem [thread:$0]  (!%p2382_p4), %s2150_s0, 1024, %s2177_s9, %s2034_s11, %s2379_s25, %s2379_s25, %s2378_s1  }
  0x8a   : > { %270 = sbr.rel (%p2383_p7) target bundleno = 462 (0x1ce), region = 40  ;;  %s2210_s22 = sshll.u32 (!%p2383_p7), %s2207_s13, 6 }
  0x8b   : > { %s273_s29 = scalar_lea.sflag (!%p2383_p7), [#allocation3], %s2207_s13  ;;  %s2214_s28 = scalar_lea.vmem (!%p2383_p7), [#allocation2], %s2210_s22 }
  0x91   : > { %1906 = dma.done.wait (%p2384_p10), %s273_s29, 1024  }
  0x92   : > { %1908 = vsyncadd (%p2384_p10), %s273_s29, 4294966272  ;;  %s281_s0 = sand.u32 1, %s2068_s14   ;;  %s2222_s17 = scalar_lea.vmem [#allocation5], %s2210_s22 }
  0x93   : > { %s282_s11 = scalar_lea.sflag [#allocation6], %s281_s0 }
  0x94   : > { %1910 = dma.done.wait (%p2384_p10), %s282_s11, 2048  }
  0x95   : > { %1912 = vsyncadd (%p2384_p10), %s282_s11, 4294965248  ;;  %s2229_s1 = scalar_lea.vmem [#allocation7], %s2210_s22  ;;  %p2385_p0 = scmp.eq.s32.totalorder %s2068_s14, 0 }
  0x97   : > { %1914 = dma.done.wait (%p2385_p0), [#allocation9], 3072   ;;  %p2386_p1 = pmov %p2385_p0 }
  0x98   : > { %v1695_v0 = vld [vmem:[#allocation8 + $0x40] sm:$0xff]   ;;  %v1697_v2 = vld [vmem:[#allocation8 + $0x48] sm:$0xff]   ;;  %v1699_v4 = vld [vmem:[#allocation8 + $0x50] sm:$0xff]   ;;  %s2271_s18 = scalar_lea.vmem [#allocation10], %s2210_s22  ;;  %s1384_s20 = sshll.u32 %s2068_s14, 10 }
  0x99   : > { %1916 = vsyncadd (%p2386_p1), [#allocation9], 4294964224  ;;  %v1696_v1 = vld [vmem:[#allocation8] sm:$0xff]   ;;  %1480 = vmatprep.subr.bf16.mxu1 %v1695_v0  ;;  %v1698_v3 = vld [vmem:[#allocation8 + $0x8] sm:$0xff]   ;;  %s1150_s21 = sshll.u32 %s2271_s18, 4  ;;  %s2286_s12 = scalar_lea.hbm %s2340_s5, %s1384_s20  ;;  %s2288_s21 = int_to_ptr.vmem [resolvable:$true] %s1150_s21 }
  0x9a   : > { %1512 = vmatprep.subr.bf16.mxu0 %v1696_v1  ;;  %1481 = vmatpush3.bf16.msra.mxu1 %v1695_v0  ;;  %v1700_v5 = vld [vmem:[#allocation8 + $0x10] sm:$0xff]   ;;  %v1701_v6 = vld [vmem:[#allocation8 + $0x58] sm:$0xff]   ;;  %v1703_v8 = vld [vmem:[#allocation8 + $0x60] sm:$0xff]   ;;  %s1137_s14 = scalar_lea.sflag [#allocation4], %s2207_s13  ;;  %s1861_s7 = scalar_lea.vmem %s2288_s21, 1024 }
  0x9b   : > { %1513 = vmatpush3.bf16.msra.mxu0 %v1696_v1  ;;  %1482 = vmatprep.subr.bf16.mxu1 %v1697_v2  ;;  %v1702_v7 = vld [vmem:[#allocation8 + $0x18] sm:$0xff]   ;;  %v1704_v9 = vld [vmem:[#allocation8 + $0x20] sm:$0xff]   ;;  %v1705_v10 = vld [vmem:[#allocation8 + $0x68] sm:$0xff]   ;;  %p1862_p2 = scmp.ne.s32.totalorder %s2288_s21, %s1861_s7  ;;  %p2387_p11 = scmp.ne.s32.totalorder %s2372_s8, 0 }
  0x9c   : > { %1514 = vmatprep.subr.bf16.mxu0 %v1698_v3  ;;  %v1706_v11 = vld [vmem:[#allocation8 + $0x28] sm:$0xff]   ;;  %v1711_v12 = vld [vmem:[%s2222_s17] sm:$0xff]   ;;  %v1707_v14 = vld [vmem:[#allocation8 + $0x70] sm:$0xff]   ;;  %s1943_s23 = smov [#allocation10]  }
  0x9d   : > { %v1712_v13 = vld [vmem:[%s2214_s28] sm:$0xff]   ;;  %1496 = vmatprep.mubr.bf16.mxu1 %v1711_v12  ;;  %v1708_v15 = vld [vmem:[#allocation8 + $0x30] sm:$0xff]   ;;  %v1709_v16 = vld [vmem:[#allocation8 + $0x78] sm:$0xff]   ;;  %p1863_p12 = pnand %p1862_p2, %p2387_p11  ;;  %s1865_s15 = sshll.u32 %s1943_s23, 4  ;;  %s1866_s15 = int_to_ptr.vmem [resolvable:$false] %s1865_s15 }
  0x9e   : > { %1483 = vmatpush3.bf16.msra.mxu1 %v1697_v2  ;;  %1528 = vmatprep.mubr.bf16.mxu0 %v1712_v13  ;;  %v1710_v17 = vld [vmem:[#allocation8 + $0x38] sm:$0xff]   ;;  %v1715_v18 = vld [vmem:[#allocation8 + $0x80] sm:$0xff]   ;;  %v1713_v19 = vld [vmem:[%s2222_s17 + $0x8] sm:$0xff]   ;;  %s1867_s30 = scalar_lea.vmem %s1866_s15, 2048  ;;  %p1868_p3 = scmp.lt.s32.totalorder %s2288_s21, %s1866_s15 }
  0x9f   : > { %1515 = vmatpush3.bf16.msra.mxu0 %v1698_v3  ;;  %1484 = vmatprep.subr.bf16.mxu1 %v1699_v4  ;;  %v1714_v20 = vld [vmem:[%s2214_s28 + $0x8] sm:$0xff]   ;;  %v1717_v22 = vld [vmem:[%s2222_s17 + $0x10] sm:$0xff]   ;;  %v1719_v25 = vld [vmem:[%s2222_s17 + $0x18] sm:$0xff]   ;;  %p1864_p13 = pneg %p1863_p12  ;;  %p1869_p8 = scmp.lt.s32.totalorder %s1867_s30, %s1861_s7 }
  0xa0   : > { %1516 = vmatprep.subr.bf16.mxu0 %v1700_v5  ;;  %v1716_v21 = vld [vmem:[#allocation8 + $0x88] sm:$0xff]   ;;  %v1718_v23 = vld [vmem:[%s2214_s28 + $0x10] sm:$0xff]   ;;  %v1720_v26 = vld [vmem:[%s2214_s28 + $0x18] sm:$0xff]  }
  0xa1   : > { %v1721_v24 = vld [vmem:[#allocation8 + $0x90] sm:$0xff]   ;;  %v1722_v27 = vld [vmem:[#allocation8 + $0x98] sm:$0xff]   ;;  %v1723_v28 = vld [vmem:[%s2222_s17 + $0x20] sm:$0xff]   ;;  %p1870_p5 = por %p1869_p8, %p1868_p3 }
  0xa2   : > { %1485 = vmatpush3.bf16.msra.mxu1 %v1699_v4  ;;  %v1724_v29 = vld [vmem:[%s2214_s28 + $0x20] sm:$0xff]   ;;  %v1725_v31 = vld [vmem:[%s2222_s17 + $0x28] sm:$0xff]   ;;  %v1729_v34 = vld [vmem:[%s2222_s17 + $0x30] sm:$0xff]  }
  0xa3   : > { %1517 = vmatpush3.bf16.msra.mxu0 %v1700_v5  ;;  %1486 = vmatprep.subr.bf16.mxu1 %v1701_v6  ;;  %v1727_v30 = vld [vmem:[#allocation8 + $0xa0] sm:$0xff]   ;;  %v1726_v32 = vld [vmem:[%s2214_s28 + $0x28] sm:$0xff]   ;;  %v1730_v35 = vld [vmem:[%s2214_s28 + $0x30] sm:$0xff]   ;;  %p1871_p9 = pnand %p1870_p5, %p1864_p13 }
  0xa4   : > { %1518 = vmatprep.subr.bf16.mxu0 %v1702_v7  ;;  %v1728_v33 = vld [vmem:[#allocation8 + $0xa8] sm:$0xff]   ;;  %v1733_v36 = vld [vmem:[#allocation8 + $0xb0] sm:$0xff]   ;;  %v1731_v37 = vld [vmem:[%s2222_s17 + $0x38] sm:$0xff]  }
  0xa5   : > { %v1732_v38 = vld [vmem:[%s2214_s28 + $0x38] sm:$0xff]   ;;  %v1735_v40 = vld [vmem:[%s2229_s1] sm:$0xff]   ;;  %v1738_v42 = vld [vmem:[%s2229_s1 + $0x28] sm:$0xff]  }
  0xa6   : > { %1487 = vmatpush3.bf16.msra.mxu1 %v1701_v6  ;;  %v1734_v39 = vld [vmem:[#allocation8 + $0xb8] sm:$0xff]   ;;  %v1736_v41 = vld [vmem:[%s2229_s1 + $0x20] sm:$0xff]   ;;  %v1737_v43 = vld [vmem:[%s2229_s1 + $0x8] sm:$0xff]  }
  0xa7   : > { %1519 = vmatpush3.bf16.msra.mxu0 %v1702_v7  ;;  %1488 = vmatprep.subr.bf16.mxu1 %v1703_v8  ;;  %v1740_v44 = vld [vmem:[%s2229_s1 + $0x30] sm:$0xff]   ;;  %v1742_v46 = vld [vmem:[%s2229_s1 + $0x38] sm:$0xff]  }
  0xa8   : > { %1520 = vmatprep.subr.bf16.mxu0 %v1704_v9  ;;  %v1739_v45 = vld [vmem:[%s2229_s1 + $0x10] sm:$0xff]   ;;  %v1741_v47 = vld [vmem:[%s2229_s1 + $0x18] sm:$0xff]  }
  0xaa   : > { %1489 = vmatpush3.bf16.msra.mxu1 %v1703_v8 }
  0xab   : > { %1521 = vmatpush3.bf16.msra.mxu0 %v1704_v9  ;;  %1490 = vmatprep.subr.bf16.mxu1 %v1705_v10 }
  0xac   : > { %1522 = vmatprep.subr.bf16.mxu0 %v1706_v11 }
  0xae   : > { %1491 = vmatpush3.bf16.msra.mxu1 %v1705_v10 }
  0xaf   : > { %1523 = vmatpush3.bf16.msra.mxu0 %v1706_v11  ;;  %1492 = vmatprep.subr.bf16.mxu1 %v1707_v14 }
  0xb0   : > { %1524 = vmatprep.subr.bf16.mxu0 %v1708_v15 }
  0xb2   : > { %1493 = vmatpush3.bf16.msra.mxu1 %v1707_v14 }
  0xb3   : > { %1525 = vmatpush3.bf16.msra.mxu0 %v1708_v15  ;;  %1494 = vmatprep.subr.bf16.mxu1 %v1709_v16 }
  0xb4   : > { %1526 = vmatprep.subr.bf16.mxu0 %v1710_v17 }
  0xb6   : > { %1495 = vmatpush3.bf16.msra.mxu1 %v1709_v16 }
  0xb7   : > { %1527 = vmatpush3.bf16.msra.mxu0 %v1710_v17  ;;  %1576 = vmatprep.subr.bf16.mxu1 %v1715_v18 }
  0xb8   : > { %1544 = vmatprep.subr.bf16.mxu0 %v1715_v18 }
  0xb9   : > { %1497 = vmatmul.mubr.bf16.vlgmr.msra.gmra.mrb[0].mxu1 %v1713_v19 }
  0xba   : > { %1529 = vmatmul.mubr.bf16.vlgmr.msra.gmra.mrb[0].mxu0 %v1714_v20  ;;  %1584 = vmatpush3.bf16.msra.mxu1 %v1715_v18 }
  0xbb   : > { %1545 = vmatpush3.bf16.msra.mxu0 %v1715_v18  ;;  %1577 = vmatprep.subr.bf16.mxu1 %v1716_v21 }
  0xbc   : > { %1546 = vmatprep.subr.bf16.mxu0 %v1716_v21  ;;  %1500 = vmatprep.mubr.bf16.mxu1 %v1717_v22 }
  0xbd   : > { %1532 = vmatprep.mubr.bf16.mxu0 %v1718_v23 }
  0xbe   : > { %1585 = vmatpush3.bf16.msra.mxu1 %v1716_v21 }
  0xbf   : > { %1547 = vmatpush3.bf16.msra.mxu0 %v1716_v21  ;;  %1578 = vmatprep.subr.bf16.mxu1 %v1721_v24  ;;  %v1343_v21 = vld [vmem:[%s2339_s4] ss:$0 sm:$0xff] }
  0xc0   : > { %1548 = vmatprep.subr.bf16.mxu0 %v1721_v24 }
  0xc1   : > { %1501 = vmatmul.mubr.bf16.gmra.mrb[4].mxu1 %v1719_v25 }
  0xc2   : > { %1533 = vmatmul.mubr.bf16.gmra.mrb[4].mxu0 %v1720_v26  ;;  %1586 = vmatpush3.bf16.msra.mxu1 %v1721_v24 }
  0xc3   : > { %1549 = vmatpush3.bf16.msra.mxu0 %v1721_v24  ;;  %1579 = vmatprep.subr.bf16.mxu1 %v1722_v27 }
  0xc4   : > { %1550 = vmatprep.subr.bf16.mxu0 %v1722_v27  ;;  %1504 = vmatprep.mubr.bf16.mxu1 %v1723_v28 }
  0xc5   : > { %1536 = vmatprep.mubr.bf16.mxu0 %v1724_v29 }
  0xc6   : > { %1587 = vmatpush3.bf16.msra.mxu1 %v1722_v27 }
  0xc7   : > { %1551 = vmatpush3.bf16.msra.mxu0 %v1722_v27  ;;  %1580 = vmatprep.subr.bf16.mxu1 %v1727_v30 }
  0xc8   : > { %1552 = vmatprep.subr.bf16.mxu0 %v1727_v30 }
  0xc9   : > { %1505 = vmatmul.mubr.bf16.gmra.mrb[8].mxu1 %v1725_v31 }
  0xca   : > { %1537 = vmatmul.mubr.bf16.gmra.mrb[8].mxu0 %v1726_v32  ;;  %1588 = vmatpush3.bf16.msra.mxu1 %v1727_v30 }
  0xcb   : > { %1553 = vmatpush3.bf16.msra.mxu0 %v1727_v30  ;;  %1581 = vmatprep.subr.bf16.mxu1 %v1728_v33 }
  0xcc   : > { %1554 = vmatprep.subr.bf16.mxu0 %v1728_v33  ;;  %1508 = vmatprep.mubr.bf16.mxu1 %v1729_v34 }
  0xcd   : > { %1540 = vmatprep.mubr.bf16.mxu0 %v1730_v35 }
  0xce   : > { %1589 = vmatpush3.bf16.msra.mxu1 %v1728_v33 }
  0xcf   : > { %1555 = vmatpush3.bf16.msra.mxu0 %v1728_v33  ;;  %1582 = vmatprep.subr.bf16.mxu1 %v1733_v36 }
  0xd0   : > { %1556 = vmatprep.subr.bf16.mxu0 %v1733_v36 }
  0xd1   : > { %1509 = vmatmul.mubr.bf16.gmra.mrb[12].mxu1 %v1731_v37 }
  0xd2   : > { %1541 = vmatmul.mubr.bf16.gmra.mrb[12].mxu0 %v1732_v38  ;;  %1590 = vmatpush3.bf16.msra.mxu1 %v1733_v36 }
  0xd3   : > { %1557 = vmatpush3.bf16.msra.mxu0 %v1733_v36  ;;  %1583 = vmatprep.subr.bf16.mxu1 %v1734_v39 }
  0xd4   : > { %1558 = vmatprep.subr.bf16.mxu0 %v1734_v39  ;;  %1560 = vmatprep.mubr.bf16.mxu0 %v1735_v40 }
  0xd5   : > { %1568 = vmatprep.mubr.bf16.mxu1 %v1736_v41 }
  0xd6   : > { %1591 = vmatpush3.bf16.msra.mxu1 %v1734_v39 }
  0xd7   : > { %1559 = vmatpush3.bf16.msra.mxu0 %v1734_v39 }
  0xd9   : > { %1569 = vmatmul.mubr.bf16.vlgmr.msra.gmra.mrb[16].mxu1 %v1738_v42 }
  0xda   : > { %1561 = vmatmul.mubr.bf16.vlgmr.msra.gmra.mrb[0].mxu0 %v1737_v43  ;;  %1572 = vmatprep.mubr.bf16.mxu1 %v1740_v44 }
  0xdb   : > { %1564 = vmatprep.mubr.bf16.mxu0 %v1739_v45 }
  0xe1   : > { %1573 = vmatmul.mubr.bf16.gmra.mrb[20].mxu1 %v1742_v46 }
  0xe2   : > { %1565 = vmatmul.mubr.bf16.gmra.mrb[4].mxu0 %v1741_v47 }
 0x18c   : > { %v1498_v48 = vpop.f32.mrb[0].mxu1 }
 0x18d   : > { %v535_v49 = vpop.f32.mrb[1].mxu1 }
 0x18e   : > { %v1499_v50 = vpop.f32.mrb[2].mxu1 }
 0x18f   : > { %v538_v51 = vpop.f32.mrb[3].mxu1 }
 0x194   : > { %v2259_v52 = vpop.f32.mrb[4].mxu1 }
 0x195   : > { %v2261_v53 = vpop.f32.mrb[5].mxu1 }
 0x196   : > { %v2263_v54 = vpop.f32.mrb[6].mxu1 }
 0x197   : > { %v2265_v55 = vpop.f32.mrb[7].mxu1 }
 0x19c   : > { %v1506_v56 = vpop.f32.mrb[8].mxu1 }
 0x19d   : > { %v1538_v57 = vpop.f32.mrb[8].mxu0  ;;  %v567_v58 = vpop.f32.mrb[9].mxu1 }
 0x19e   : > { %v769_v59 = vadd.f32 %v1538_v57, %v1506_v56  ;;  %v760_v60 = vpop.f32.mrb[9].mxu0  ;;  %v1507_v61 = vpop.f32.mrb[10].mxu1 }
 0x19f   : > { %v761_v62 = vadd.f32 %v760_v60, %v567_v58  ;;  %v1539_v63 = vpop.f32.mrb[10].mxu0  ;;  %v570_v0 = vpop.f32.mrb[11].mxu1 }
 0x1a0   : > { %v772_v1 = vadd.f32 %v1539_v63, %v1507_v61  ;;  %v763_v2 = vpop.f32.mrb[11].mxu0 }
 0x1a1   : > { %v764_v3 = vadd.f32 %v763_v2, %v570_v0 }
 0x1a4   : > { %v1510_v4 = vpop.f32.mrb[12].mxu1 }
 0x1a5   : > { %v1542_v5 = vpop.f32.mrb[12].mxu0  ;;  %v583_v6 = vpop.f32.mrb[13].mxu1 }
 0x1a6   : > { %v785_v7 = vadd.f32 %v1542_v5, %v1510_v4  ;;  %v776_v8 = vpop.f32.mrb[13].mxu0  ;;  %v1511_v9 = vpop.f32.mrb[14].mxu1 }
 0x1a7   : > { %v777_v10 = vadd.f32 %v776_v8, %v583_v6  ;;  %v1543_v11 = vpop.f32.mrb[14].mxu0  ;;  %v586_v12 = vpop.f32.mrb[15].mxu1 }
 0x1a8   : > { %v788_v13 = vadd.f32 %v1543_v11, %v1511_v9  ;;  %v779_v14 = vpop.f32.mrb[15].mxu0 }
 0x1a9   : > { %v780_v15 = vadd.f32 %v779_v14, %v586_v12 }
 0x1ac   : > { %v1570_v16 = vpop.f32.mrb[16].mxu1 }
 0x1ad   : > { %v1562_v17 = vpop.f32.mrb[0].mxu0  ;;  %v1027_v18 = vadd.f32 %v1570_v16, %v769_v59  ;;  %v986_v19 = vpop.f32.mrb[17].mxu1 }
 0x1ae   : > { %v1592_v20 = vadd.f32 %v1562_v17, %v1498_v48  ;;  %v954_v22 = vpop.f32.mrb[1].mxu0  ;;  %v1025_v23 = vadd.f32 %v986_v19, %v761_v62  ;;  %v1571_v24 = vpop.f32.mrb[18].mxu1 }
 0x1af   : > { %v1593_v25 = vadd.f32 %v954_v22, %v535_v49  ;;  %v1563_v26 = vpop.f32.mrb[2].mxu0  ;;  %v1028_v27 = vadd.f32 %v1571_v24, %v772_v1  ;;  %v989_v28 = vpop.f32.mrb[19].mxu1  ;;  %v1050_v32 = vadd.f32 %v1343_v21, %v1027_v18 }
 0x1b0   : > { %v1594_v29 = vadd.f32 %v1563_v26, %v1499_v50  ;;  %v957_v30 = vpop.f32.mrb[3].mxu0  ;;  %v1026_v31 = vadd.f32 %v989_v28, %v764_v3  ;;  %v1042_v35 = vadd.f32 %v1592_v20, %v1343_v21  ;;  %v1048_v36 = vadd.f32 %v1343_v21, %v1025_v23 }
 0x1b1   : > { %v1051_v33 = vadd.f32 %v1343_v21, %v1028_v27  ;;  %v1595_v34 = vadd.f32 %v957_v30, %v538_v51  ;;  %v1040_v39 = vadd.f32 %v1593_v25, %v1343_v21 }
 0x1b2   : > { %v1043_v37 = vadd.f32 %v1594_v29, %v1343_v21  ;;  %v1049_v38 = vadd.f32 %v1343_v21, %v1026_v31 }
 0x1b3   : > { %v1413_v40 = vpack.c.bf16 %v1051_v33, %v1050_v32  ;;  %v1041_v41 = vadd.f32 %v1595_v34, %v1343_v21 }
 0x1b4   : > { %v1393_v42 = vpack.c.bf16 %v1043_v37, %v1042_v35  ;;  %v1408_v43 = vpack.c.bf16 %v1049_v38, %v1048_v36  ;;  %v1574_v44 = vpop.f32.mrb[20].mxu1 }
 0x1b5   : > { %1429 = vst [vmem:[%s2271_s18 + $0x28] sm:$0xff] %v1413_v40   ;;  %v1388_v45 = vpack.c.bf16 %v1041_v41, %v1040_v39  ;;  %v1566_v46 = vpop.f32.mrb[4].mxu0  ;;  %v1031_v47 = vadd.f32 %v1574_v44, %v785_v7  ;;  %v1002_v48 = vpop.f32.mrb[21].mxu1 }
 0x1b6   : > { %1425 = vst [vmem:[%s2271_s18 + $0x8] sm:$0xff] %v1393_v42   ;;  %1428 = vst [vmem:[%s2271_s18 + $0x20] sm:$0xff] %v1408_v43   ;;  %v1596_v49 = vadd.f32 %v1566_v46, %v2259_v52  ;;  %v970_v50 = vpop.f32.mrb[5].mxu0  ;;  %v1029_v51 = vadd.f32 %v1002_v48, %v777_v10  ;;  %v1575_v56 = vpop.f32.mrb[22].mxu1 }
 0x1b7   : > { %1389 = vst [vmem:[%s2271_s18] sm:$0xff] %v1388_v45   ;;  %v1597_v57 = vadd.f32 %v970_v50, %v2261_v53  ;;  %v1567_v58 = vpop.f32.mrb[6].mxu0  ;;  %v1032_v59 = vadd.f32 %v1575_v56, %v788_v13  ;;  %v1005_v60 = vpop.f32.mrb[23].mxu1  ;;  %v1054_v0 = vadd.f32 %v1343_v21, %v1031_v47 }
 0x1b8   : > { %v1598_v61 = vadd.f32 %v1567_v58, %v2263_v54  ;;  %v973_v62 = vpop.f32.mrb[7].mxu0  ;;  %v1030_v63 = vadd.f32 %v1005_v60, %v780_v15  ;;  %v1046_v52 = vadd.f32 %v1596_v49, %v1343_v21  ;;  %v1052_v53 = vadd.f32 %v1343_v21, %v1029_v51 }
 0x1b9   : > { %v1055_v1 = vadd.f32 %v1343_v21, %v1032_v59  ;;  %v1599_v2 = vadd.f32 %v973_v62, %v2265_v55  ;;  %v1044_v5 = vadd.f32 %v1597_v57, %v1343_v21 }
 0x1ba   : > { %v1047_v3 = vadd.f32 %v1598_v61, %v1343_v21  ;;  %v1053_v4 = vadd.f32 %v1343_v21, %v1030_v63 }
 0x1bb   : > { %v1423_v54 = vpack.c.bf16 %v1055_v1, %v1054_v0  ;;  %v1045_v6 = vadd.f32 %v1599_v2, %v1343_v21 }
 0x1bc   : > { %v1403_v7 = vpack.c.bf16 %v1047_v3, %v1046_v52  ;;  %v1418_v8 = vpack.c.bf16 %v1053_v4, %v1052_v53 }
 0x1bd   : > { %1431 = vst [vmem:[%s2271_s18 + $0x38] sm:$0xff] %v1423_v54   ;;  %v1398_v55 = vpack.c.bf16 %v1045_v6, %v1044_v5 }
 0x1be   : > { %1427 = vst [vmem:[%s2271_s18 + $0x18] sm:$0xff] %v1403_v7   ;;  %1430 = vst [vmem:[%s2271_s18 + $0x30] sm:$0xff] %v1418_v8  }
 0x1bf   : > { %1426 = vst [vmem:[%s2271_s18 + $0x10] sm:$0xff] %v1398_v55  }
 0x1c0   : > { %1874 = shalt.err (!%p1871_p9)
}
 0x1c1   : > { %s1875_s27 = scalar_lea.hbm %s2286_s12, 1024  ;;  %s1879_s6 = scalar_lea.hbm %s2340_s5, 8192 }
 0x1c2   : > { %p1876_p6 = scmp.ne.s32.totalorder %s2286_s12, %s1875_s27  ;;  %p1880_p10 = scmp.lt.u32.totalorder %s2286_s12, %s2340_s5 }
 0x1c3   : > { %p1881_p0 = scmp.lt.u32.totalorder %s1879_s6, %s1875_s27  ;;  %p1883_p2 = scmp.lt.u32.totalorder %s1875_s27, %s2286_s12 }
 0x1c4   : > { %p1877_p4 = pnand %p1876_p6, %p2387_p11 }
 0x1c5   : > { %p1882_p1 = por %p1881_p0, %p1880_p10 }
 0x1c6   : > { %p1878_p7 = pneg %p1877_p4 }
 0x1c7   : > { %p1884_p12 = por %p1883_p2, %p1882_p1 }
 0x1c9   : > { %p1885_p13 = pnand %p1884_p12, %p1878_p7 }
 0x1cb   : > { %1888 = shalt.err (!%p1885_p13)
}
 0x1cc   : > { %s1944_s28 = smov 64   ;;  %s1945_s0 = smov 4  }
 0x1cd   : > { %1634 = dma.vmem_to_hbm [thread:$0]  (%p2387_p11), %s2288_s21, 1024, %s2286_s12, %s1137_s14, %s1944_s28, %s1944_s28, %s1945_s0  }
 0x1ce PF: > { %s2388_s11 = sld [smem:[#allocation17_spill]]  ;;  %s2389_s17 = sld [smem:[#allocation15_spill]] }
 0x1cf   : > { %s2390_s1 = sld [smem:[#allocation20_spill]] }
 0x1d4   : > { %p1657_p3 = scmp.ge.s32.totalorder %s2388_s11, 2  ;;  %s1165_s16 = sand.u32 1, %s2389_s17  }
 0x1d5   : > { %p2391_p8 = scmp.ne.s32.totalorder %s2390_s1, 0  ;;  %s1166_s25 = scalar_lea.sflag [#allocation4], %s1165_s16 }
 0x1d7   : > { %p1651_p5 = pnand %p1657_p3, %p2391_p8 }
 0x1d9   : > { %1918 = dma.done.wait (!%p1651_p5), %s1166_s25, 1024  }
 0x1da   : > { %1920 = vsyncadd (!%p1651_p5), %s1166_s25, 4294966272  ;;  %s2392_s21 = sld [smem:[#allocation18_spill]]  ;;  %s2393_s20 = sld [smem:[#allocation16_spill]] }
 0x1db   : > { %s2394_s9 = sld [smem:[#allocation19_spill]]  ;;  %s2395_s18 = smov %s1927_s19 }
 0x1e0   : > { %p22_p9 = scmp.ge.s32.totalorder %s2392_s21, 10   ;;  %s2396_s19 = smov %s2393_s20 }
 0x1e1   : > { %s2397_s20 = smov %s2394_s9 }
 0x1e2   :  { %24 = sbr.rel (!%p22_p9) target bundleno = 11 (0xb), region = 115 }
 0x1e9   :  { %1171 = vsyncpa [#allocation3], 1 }
 0x1ea   :  { %1173 = vsyncpa [#allocation3 + $0x1], 1 }
 0x1eb   :  { %1174 = vsyncpa [#allocation6], 1 }
 0x1ec   :  { %1176 = vsyncpa [#allocation6 + $0x1], 1 }
 0x1ed   :  { %1177 = vsyncpa [#allocation9], 1 }
 0x1ee   :  { %1178 = vsyncpa [#allocation4], 1 }
 0x1ef   :  { %1180 = vsyncpa [#allocation4 + $0x1], 1 }

</bundles_post_ra>
